<compile_context>
chip_gen: v5e
topology: v5e:2x2
jax: 0.10.0
libtpu: 0.0.40
codegen_flags: <defaults>
</compile_context>

<pallas_src>
import functools

import jax
import jax.numpy as jnp
from jax import lax
from jax.experimental import pallas as pl
from jax.experimental.pallas import tpu as pltpu

EPS = 1e-5  # InstanceNorm3d default eps


def _round_up(x, m):
    return ((x + m - 1) // m) * m


# ----------------------------- Pallas kernel ------------------------------- #
def _patch_embed_kernel(p_ref, w_ref, g_ref, b_ref, o_ref):
    # p_ref: (1, K_pad, N)  bf16 im2col patches for this batch (K sublanes, N lanes)
    # w_ref: (K_pad, E_pad) bf16 conv weight (k-major), zero-padded
    # g_ref: (1, E_pad)     f32 instance-norm gamma (zero-padded)
    # b_ref: (1, E_pad)     f32 instance-norm beta  (zero-padded)
    # o_ref: (1, N, E_pad)  f32 output block
    p = p_ref[0]                      # (K_pad, N) bf16
    w = w_ref[...]                    # (K_pad, E_pad) bf16

    # Conv3d-as-matmul on the MXU: contract K (dim 0 of both), bf16 in / f32 acc.
    y = lax.dot_general(
        p, w,
        dimension_numbers=(((0,), (0,)), ((), ())),
        preferred_element_type=jnp.float32)          # (N, E_pad) f32

    # InstanceNorm3d: per (batch, channel) stats over the N spatial positions.
    # Single pass: sum and sum-of-squares (biased variance, torch default).
    inv_n = jnp.float32(1.0 / y.shape[0])
    mean = jnp.sum(y, axis=0, keepdims=True) * inv_n             # (1, E_pad)
    mean_sq = jnp.sum(y * y, axis=0, keepdims=True) * inv_n      # (1, E_pad)
    var = mean_sq - mean * mean
    y_n = (y - mean) * lax.rsqrt(var + EPS)

    # Affine + ReLU (padded channels: gamma = beta = 0 -> output 0, sliced away).
    out = jnp.maximum(y_n * g_ref[...] + b_ref[...], 0.0)
    o_ref[0] = out.astype(o_ref.dtype)


# ------------------------------ JAX glue ------------------------------------ #
def _im2col_3d(x, patch_size):
    """x: (B, C, D, H, W) -> patches (B, C*27, N) for k=3, pad=1, stride=patch.

    Spatial axis N is LAST (lane-dense for the kernel); no HBM transpose needed.
    K ordering: c slow, (kd, kh, kw) fast -- matches conv_weight.reshape(E, C*27).
    """
    B, C, D, H, W = x.shape
    sd, sh, sw = patch_size
    Dp = (D + 2 - 3) // sd + 1
    Hp = (H + 2 - 3) // sh + 1
    Wp = (W + 2 - 3) // sw + 1
    xp = jnp.pad(x, ((0, 0), (0, 0), (1, 1), (1, 1), (1, 1)))
    cols = []
    for kd in range(3):
        for kh in range(3):
            for kw in range(3):
                sl = xp[:, :,
                        kd:kd + (Dp - 1) * sd + 1:sd,
                        kh:kh + (Hp - 1) * sh + 1:sh,
                        kw:kw + (Wp - 1) * sw + 1:sw]   # (B, C, Dp, Hp, Wp)
                cols.append(sl)
    cols = jnp.stack(cols, axis=2)                       # (B, C, 27, Dp, Hp, Wp)
    patches = cols.reshape(B, C * 27, Dp * Hp * Wp)      # (B, K, N) -- pure reshape
    return patches, (Dp, Hp, Wp)


@functools.partial(jax.jit, static_argnames=("patch_size",))
def patch_embed_3d_en(x, conv_weight, gamma, beta, *, patch_size):
    """Forward of PatchEmbed3D_en (is_proj1=False, norm='IN3').

    x:           (B, C, D, H, W) float32
    conv_weight: (E, C, 3, 3, 3) float32   (torch Conv3d layout OIDHW)
    gamma, beta: (E,) float32
    returns:     (B, num_patches, E), (D//pd, H//ph, W//ph)  [module typo kept]
    """
    B, C, D, H, W = x.shape
    E = conv_weight.shape[0]
    K = C * 27
    K_pad = _round_up(K, 64)     # bf16 sublane / MXU contracting alignment
    E_pad = _round_up(E, 128)    # lane-dense output stores

    # bf16 operands for the MXU; halves HBM<->VMEM DMA bytes of the patch stream.
    xb = x.astype(jnp.bfloat16)
    patches, (Dp, Hp, Wp) = _im2col_3d(xb, patch_size)       # (B, K, N) bf16
    N = Dp * Hp * Wp
    patches = jnp.pad(patches, ((0, 0), (0, K_pad - K), (0, 0)))

    w_mat = conv_weight.astype(jnp.bfloat16).reshape(E, K).T     # (K, E), same k order
    w_mat = jnp.pad(w_mat, ((0, K_pad - K), (0, E_pad - E)))     # (K_pad, E_pad)
    g_pad = jnp.pad(gamma.astype(jnp.float32), (0, E_pad - E)).reshape(1, E_pad)
    b_pad = jnp.pad(beta.astype(jnp.float32), (0, E_pad - E)).reshape(1, E_pad)

    cost = pl.CostEstimate(
        flops=2 * B * N * K_pad * E_pad,
        transcendentals=B * E_pad,                      # rsqrt per (batch, channel)
        bytes_accessed=patches.nbytes + w_mat.nbytes
        + g_pad.nbytes + b_pad.nbytes + B * N * E_pad * 4)

    out = pl.pallas_call(
        _patch_embed_kernel,
        out_shape=jax.ShapeDtypeStruct((B, N, E_pad), jnp.float32),
        grid_spec=pltpu.PrefetchScalarGridSpec(
            num_scalar_prefetch=0,
            grid=(B,),
            in_specs=[
                pl.BlockSpec((1, K_pad, N), lambda b: (b, 0, 0)),
                pl.BlockSpec((K_pad, E_pad), lambda b: (0, 0)),
                pl.BlockSpec((1, E_pad), lambda b: (0, 0)),
                pl.BlockSpec((1, E_pad), lambda b: (0, 0)),
            ],
            out_specs=pl.BlockSpec((1, N, E_pad), lambda b: (b, 0, 0)),
        ),
        compiler_params=pltpu.CompilerParams(
            dimension_semantics=("parallel",),          # batch steps -> both v7x TCs
            vmem_limit_bytes=48 * 1024 * 1024),
        cost_estimate=cost,
    )(patches, w_mat, g_pad, b_pad)

    if E_pad != E:
        out = out[:, :, :E]

    # Module returns (x, (D // ps[0], H // ps[1], W // ps[1]))  (typo kept verbatim)
    return out, (D // patch_size[0], H // patch_size[1], W // patch_size[1])


# ------------------------------ Reference ----------------------------------- #
def _reference(x, conv_weight, gamma, beta, patch_size):
    # Same bf16-rounded operands as the kernel, f32 math everywhere else.
    xb = x.astype(jnp.bfloat16).astype(jnp.float32)
    wb = conv_weight.astype(jnp.bfloat16).astype(jnp.float32)
    y = lax.conv_general_dilated(
        xb, wb, window_strides=patch_size,
        padding=[(1, 1), (1, 1), (1, 1)],
        dimension_numbers=("NCDHW", "OIDHW", "NCDHW"),
        precision=lax.Precision.HIGHEST)
    mean = y.mean(axis=(2, 3, 4), keepdims=True)
    var = ((y - mean) ** 2).mean(axis=(2, 3, 4), keepdims=True)
    y = (y - mean) * lax.rsqrt(var + EPS)
    y = y * gamma.reshape(1, -1, 1, 1, 1) + beta.reshape(1, -1, 1, 1, 1)
    y = jnp.maximum(y, 0.0)
    B, E = y.shape[:2]
    return jnp.transpose(y.reshape(B, E, -1), (0, 2, 1))


# -------------------------------- Main --------------------------------------- #
if __name__ == "__main__":
    # Small, module-consistent shapes. N = 4*8*8 = 256 patches per batch
    # (fills the MXU rows); embed_dim=96 exercises the E->128 padding path.
    B, C = 2, 2
    img_size = (16, 64, 64)
    patch_size = (4, 8, 8)
    embed_dim = 96

    key = jax.random.PRNGKey(0)
    kx, kw, kg, kb = jax.random.split(key, 4)
    x = jax.random.normal(kx, (B, C) + img_size, dtype=jnp.float32)
    conv_weight = jax.random.normal(kw, (embed_dim, C, 3, 3, 3),
                                    dtype=jnp.float32) * 0.1
    gamma = 1.0 + 0.1 * jax.random.normal(kg, (embed_dim,), dtype=jnp.float32)
    beta = 0.1 * jax.random.normal(kb, (embed_dim,), dtype=jnp.float32)

    out, dims = patch_embed_3d_en(x, conv_weight, gamma, beta,
                                  patch_size=patch_size)
    out = jax.block_until_ready(out)

    ref = _reference(x, conv_weight, gamma, beta, patch_size)
    num_patches = ((img_size[0] // patch_size[0])
                   * (img_size[1] // patch_size[1])
                   * (img_size[2] // patch_size[2]))
    assert out.shape == (B, num_patches, embed_dim), out.shape
    assert dims == (img_size[0] // patch_size[0],
                    img_size[1] // patch_size[1],
                    img_size[2] // patch_size[1])
    max_err = float(jnp.max(jnp.abs(out - ref)))
    assert jnp.allclose(out, ref, rtol=1e-3, atol=1e-3), max_err

    print("KERNEL_OK")
</pallas_src>

<mosaic_0001>
module attributes {stable_mosaic.version = 11 : i64} {
  func.func @_patch_embed_kernel(%arg0: i32, %arg1: memref<1x64x256xbf16, #tpu.memory_space<vmem>>, %arg2: memref<64x128xbf16, #tpu.memory_space<vmem>>, %arg3: memref<1x128xf32, #tpu.memory_space<vmem>>, %arg4: memref<1x128xf32, #tpu.memory_space<vmem>>, %arg5: memref<1x256x128xf32, #tpu.memory_space<vmem>>) attributes {dimension_semantics = [#tpu.dimension_semantics<parallel>], iteration_bounds = array<i64: 2>, scalar_prefetch = 0 : i64, scratch_operands = 0 : i64, tpu.core_type = #tpu.core_type<tc>, window_params = [{transform_indices = @transform_0, window_bounds = array<i64: 1, 64, 256>}, {pipeline_mode = #tpu.pipeline_mode<synchronous>, transform_indices = @transform_1, window_bounds = array<i64: 64, 128>}, {pipeline_mode = #tpu.pipeline_mode<synchronous>, transform_indices = @transform_2, window_bounds = array<i64: 1, 128>}, {pipeline_mode = #tpu.pipeline_mode<synchronous>, transform_indices = @transform_3, window_bounds = array<i64: 1, 128>}, {transform_indices = @transform_4, window_bounds = array<i64: 1, 256, 128>}]} {
    %c0 = arith.constant 0 : index
    %c0_0 = arith.constant 0 : index
    %c0_1 = arith.constant 0 : index
    %0 = vector.load %arg1[%c0, %c0_0, %c0_1] : memref<1x64x256xbf16, #tpu.memory_space<vmem>>, vector<1x64x256xbf16>
    %1 = vector.shape_cast %0 : vector<1x64x256xbf16> to vector<64x256xbf16>
    %c0_2 = arith.constant 0 : index
    %c0_3 = arith.constant 0 : index
    %2 = vector.load %arg2[%c0_2, %c0_3] : memref<64x128xbf16, #tpu.memory_space<vmem>>, vector<64x128xbf16>
    %cst = arith.constant dense<0.000000e+00> : vector<256x128xf32>
    %3 = tpu.matmul %1, %2, %cst {dimension_numbers = #tpu.dot_dimension_numbers<[0], [0], [1], [1], [0, 1, 1, 1], [], []>} : vector<64x256xbf16>, vector<64x128xbf16>, vector<256x128xf32> -> vector<256x128xf32>
    %cst_4 = arith.constant dense<0.000000e+00> : vector<128xf32>
    %4 = vector.multi_reduction <add>, %3, %cst_4 [0] : vector<256x128xf32> to vector<128xf32>
    %5 = vector.shape_cast %4 : vector<128xf32> to vector<1x128xf32>
    %cst_5 = arith.constant 3.906250e-03 : f32
    %6 = vector.broadcast %cst_5 : f32 to vector<1x128xf32>
    %7 = arith.mulf %5, %6 : vector<1x128xf32>
    %8 = arith.mulf %3, %3 : vector<256x128xf32>
    %cst_6 = arith.constant dense<0.000000e+00> : vector<128xf32>
    %9 = vector.multi_reduction <add>, %8, %cst_6 [0] : vector<256x128xf32> to vector<128xf32>
    %10 = vector.shape_cast %9 : vector<128xf32> to vector<1x128xf32>
    %cst_7 = arith.constant 3.906250e-03 : f32
    %11 = vector.broadcast %cst_7 : f32 to vector<1x128xf32>
    %12 = arith.mulf %10, %11 : vector<1x128xf32>
    %13 = arith.mulf %7, %7 : vector<1x128xf32>
    %14 = arith.subf %12, %13 : vector<1x128xf32>
    %15 = vector.broadcast %7 : vector<1x128xf32> to vector<256x128xf32>
    %16 = arith.subf %3, %15 : vector<256x128xf32>
    %cst_8 = arith.constant 9.99999974E-6 : f32
    %17 = vector.broadcast %cst_8 : f32 to vector<1x128xf32>
    %18 = arith.addf %14, %17 : vector<1x128xf32>
    %19 = math.rsqrt %18 : vector<1x128xf32>
    %20 = vector.broadcast %19 : vector<1x128xf32> to vector<256x128xf32>
    %21 = arith.mulf %16, %20 : vector<256x128xf32>
    %c0_9 = arith.constant 0 : index
    %c0_10 = arith.constant 0 : index
    %22 = vector.load %arg3[%c0_9, %c0_10] : memref<1x128xf32, #tpu.memory_space<vmem>>, vector<1x128xf32>
    %23 = vector.broadcast %22 : vector<1x128xf32> to vector<256x128xf32>
    %24 = arith.mulf %21, %23 : vector<256x128xf32>
    %c0_11 = arith.constant 0 : index
    %c0_12 = arith.constant 0 : index
    %25 = vector.load %arg4[%c0_11, %c0_12] : memref<1x128xf32, #tpu.memory_space<vmem>>, vector<1x128xf32>
    %26 = vector.broadcast %25 : vector<1x128xf32> to vector<256x128xf32>
    %27 = arith.addf %24, %26 : vector<256x128xf32>
    %cst_13 = arith.constant 0.000000e+00 : f32
    %28 = vector.broadcast %cst_13 : f32 to vector<256x128xf32>
    %29 = arith.maximumf %27, %28 : vector<256x128xf32>
    %c0_14 = arith.constant 0 : index
    %c0_15 = arith.constant 0 : index
    %c0_16 = arith.constant 0 : index
    %30 = vector.load %arg5[%c0_14, %c0_15, %c0_16] : memref<1x256x128xf32, #tpu.memory_space<vmem>>, vector<1x256x128xf32>
    %31 = vector.shape_cast %30 : vector<1x256x128xf32> to vector<256x128xf32>
    %32 = vector.shape_cast %29 : vector<256x128xf32> to vector<1x256x128xf32>
    tpu.vector_store %arg5[%c0_14, %c0_15, %c0_16], %32 {strides = array<i32>} : memref<1x256x128xf32, #tpu.memory_space<vmem>>, vector<1x256x128xf32>,
    return
  }
  func.func @transform_0(%arg0: i32) -> (i32, i32, i32) {
    %c0_i32 = arith.constant 0 : i32
    %c0_i32_0 = arith.constant 0 : i32
    %c0_i32_1 = arith.constant 0 : i32
    return %arg0, %c0_i32, %c0_i32_0 : i32, i32, i32
  }
  func.func @transform_1(%arg0: i32) -> (i32, i32) {
    %c0_i32 = arith.constant 0 : i32
    %c0_i32_0 = arith.constant 0 : i32
    %c0_i32_1 = arith.constant 0 : i32
    return %c0_i32, %c0_i32_0 : i32, i32
  }
  func.func @transform_2(%arg0: i32) -> (i32, i32) {
    %c0_i32 = arith.constant 0 : i32
    %c0_i32_0 = arith.constant 0 : i32
    %c0_i32_1 = arith.constant 0 : i32
    return %c0_i32, %c0_i32_0 : i32, i32
  }
  func.func @transform_3(%arg0: i32) -> (i32, i32) {
    %c0_i32 = arith.constant 0 : i32
    %c0_i32_0 = arith.constant 0 : i32
    %c0_i32_1 = arith.constant 0 : i32
    return %c0_i32, %c0_i32_0 : i32, i32
  }
  func.func @transform_4(%arg0: i32) -> (i32, i32, i32) {
    %c0_i32 = arith.constant 0 : i32
    %c0_i32_0 = arith.constant 0 : i32
    %c0_i32_1 = arith.constant 0 : i32
    return %arg0, %c0_i32, %c0_i32_0 : i32, i32, i32
  }
}

</mosaic_0001>

<bundles_post_ra>
// kernel: patch_embed_3d_en.1
= control target key start
LH: loop header
LB: loop body
LE: loop exit
PB: predicated region body
PF: predicated region fallthrough
CT: control target
= control target key end

     0   :  { %s964_s15 = smov 0   ;;  %s1443_s0 = inlined_call_operand.vmem [shape: bf16[2,64,256], index: 0, kind: input, shape index: {}]   ;;  %s1444_s1 = inlined_call_operand.vmem [shape: bf16[64,128], index: 1, kind: input, shape index: {}]   ;;  %s1445_s2 = inlined_call_operand.vmem [shape: f32[1,128], index: 2, kind: input, shape index: {}]   ;;  %s1446_s3 = inlined_call_operand.vmem [shape: f32[1,128], index: 3, kind: input, shape index: {}]   ;;  %s1447_s4 = inlined_call_operand.vmem [shape: f32[2,256,128], index: 4, kind: output, shape index: {}]  }
   0x1 LB: > { %s817_s16 = sadd.s32 4294967295, %s937_s15   ;;  %p821_p0 = scmp.ge.s32.totalorder %s937_s15, 1  ;;  %s937_s15 = sphi %s964_s15, %s14_s15  }
   0x2   : > { %p162_p1 = scmp.lt.s32.totalorder %s937_s15, 3 }
   0x4   : > { %p163_p2 = pnand %p821_p0, %p162_p1 }
   0x5   : > { %p188_p3 = scmp.lt.s32.totalorder (!%p163_p2), %s817_s16, 1 }
   0x6   : > { %166 = sbr.rel (%p163_p2) target bundleno = 551 (0x227), region = 36 }
   0xb   : > { %s1449_s16 = smov (!%p188_p3, %s817_s16), 1  ;;  %v905_v12 = vld [vmem:[%s1444_s1 + $0x18] sm:$0xff]  ;;  %v904_v13 = vld [vmem:[%s1444_s1 + $0x10] sm:$0xff]  ;;  %v903_v14 = vld [vmem:[%s1444_s1 + $0x8] sm:$0xff]  ;;  %vm303_vm0 = vcmask 523264  }
   0xc   : > { %s892_s17 = sshll.u32 %s1449_s16, 6  ;;  %356 = vmatpush.bf16.msra.mxu0 %v905_v12  ;;  %907 = vmatpush.bf16.msra.mxu2 %v905_v12  ;;  %v902_v19 = vld [vmem:[%s1444_s1] sm:$0xff]  ;;  %s893_s7 = sshll.u32 %s1449_s16, 8 }
   0xd   : > { %s978_s20 = scalar_lea.vmem %s1443_s0, %s892_s17  ;;  %906 = vmatpush.bf16.msra.mxu1 %v905_v12  ;;  %908 = vmatpush.bf16.msra.mxu3 %v905_v12  ;;  %s1296_s10 = scalar_lea.vmem %s1447_s4, %s893_s7 }
   0xe   : > { %v894_v0 = vld [vmem:[%s978_s20 + $0x4] sm:$0xf]  ;;  %v828_v1 = vld [vmem:[%s978_s20] sm:$0xf]  ;;  %v830_v2 = vld [vmem:[%s978_s20 + $0x8] sm:$0xf0] }
   0xf   : > { %v895_v3 = vld [vmem:[%s978_s20 + $0x4] sm:$0xf0]  ;;  %v833_v4 = vor.u32 %v894_v0, %v830_v2  ;;  %v896_v6 = vld [vmem:[%s978_s20 + $0x14] sm:$0xf]  ;;  %v836_v7 = vld [vmem:[%s978_s20 + $0x10] sm:$0xf] }
  0x10   : > { %v829_v5 = vor.u32 %v895_v3, %v828_v1  ;;  %v838_v8 = vld [vmem:[%s978_s20 + $0x18] sm:$0xf0]  ;;  %v897_v9 = vld [vmem:[%s978_s20 + $0x14] sm:$0xf0]  ;;  %357 = vmatpush.bf16.msra.mxu0 %v904_v13  ;;  %910 = vmatpush.bf16.msra.mxu2 %v904_v13  ;;  %v898_v15 = vld [vmem:[%s978_s20 + $0x24] sm:$0xf] }
  0x11   : > { %v837_v10 = vor.u32 %v897_v9, %v836_v7  ;;  %v841_v11 = vor.u32 %v896_v6, %v838_v8  ;;  %909 = vmatpush.bf16.msra.mxu1 %v904_v13  ;;  %911 = vmatpush.bf16.msra.mxu3 %v904_v13  ;;  %v844_v16 = vld [vmem:[%s978_s20 + $0x20] sm:$0xf]  ;;  %v846_v17 = vld [vmem:[%s978_s20 + $0x28] sm:$0xf0]  ;;  %v899_v18 = vld [vmem:[%s978_s20 + $0x24] sm:$0xf0] }
  0x12   : > { %255 = vxpose.binary.xlu0.c.b16.start [1/8] (short) %v833_v4, %v829_v5, 128  ;;  %v845_v20 = vor.u32 %v899_v18, %v844_v16  ;;  %v849_v21 = vor.u32 %v898_v15, %v846_v17  ;;  %v900_v22 = vld [vmem:[%s978_s20 + $0x34] sm:$0xf]  ;;  %v852_v23 = vld [vmem:[%s978_s20 + $0x30] sm:$0xf]  ;;  %v854_v24 = vld [vmem:[%s978_s20 + $0x38] sm:$0xf0] }
  0x13   : > { %v901_v25 = vld [vmem:[%s978_s20 + $0x34] sm:$0xf0]  ;;  %v857_v27 = vor.u32 %v900_v22, %v854_v24 }
  0x14   : > { %358 = vmatpush.bf16.msra.mxu0 %v903_v14  ;;  %913 = vmatpush.bf16.msra.mxu2 %v903_v14  ;;  %v853_v26 = vor.u32 %v901_v25, %v852_v23 }
  0x15   : > { %912 = vmatpush.bf16.msra.mxu1 %v903_v14  ;;  %914 = vmatpush.bf16.msra.mxu3 %v903_v14 }
  0x18   : > { %359 = vmatpush.bf16.msra.mxu0 %v902_v19  ;;  %916 = vmatpush.bf16.msra.mxu2 %v902_v19 }
  0x19   : > { %915 = vmatpush.bf16.msra.mxu1 %v902_v19  ;;  %917 = vmatpush.bf16.msra.mxu3 %v902_v19 }
  0x22   : > { %256 = vxpose.binary.xlu0.c.b16.cont [2/8] (short) %v841_v11, %v837_v10, 128 }
  0x32   : > { %257 = vxpose.binary.xlu0.c.b16.cont [3/8] (short) %v849_v21, %v845_v20, 128 }
  0x42   : > { %258 = vxpose.binary.xlu0.c.b16.end [4/8] (short) %v857_v27, %v853_v26, 128 }
  0xbe   : > { %v263_v28 = vpop.trf.xlu0 }
  0xbf   : > { %874 = vmatmul.msk.bf16.vlgmr.msra.gmra.mxu0 %vm303_vm0, %v263_v28 }
  0xc6   : > { %v264_v29 = vpop.trf.xlu0 }
  0xc7   : > { %882 = vmatmul.msk.bf16.vlgmr.msra.gmra.mxu2 %vm303_vm0, %v264_v29 }
  0xce   : > { %v265_v30 = vpop.trf.xlu0 }
  0xcf   : > { %875 = vmatmul.msk.bf16.gmra.mxu0 %vm303_vm0, %v265_v30 }
  0xd6   : > { %v266_v31 = vpop.trf.xlu0 }
  0xd7   : > { %883 = vmatmul.msk.bf16.gmra.mxu2 %vm303_vm0, %v266_v31 }
  0xde   : > { %v267_v32 = vpop.trf.xlu0 }
  0xdf   : > { %876 = vmatmul.msk.bf16.gmra.mxu0 %vm303_vm0, %v267_v32 }
  0xe6   : > { %v268_v33 = vpop.trf.xlu0 }
  0xe7   : > { %884 = vmatmul.msk.bf16.gmra.mxu2 %vm303_vm0, %v268_v33 }
  0xee   : > { %v269_v34 = vpop.trf.xlu0 }
  0xef   : > { %877 = vmatmul.msk.bf16.gmra.mxu0 %vm303_vm0, %v269_v34 }
  0xf6   : > { %v270_v35 = vpop.trf.xlu0 }
  0xf7   : > { %885 = vmatmul.msk.bf16.gmra.mxu2 %vm303_vm0, %v270_v35 }
  0xfe   : > { %v271_v36 = vpop.trf.xlu0 }
  0xff   : > { %878 = vmatmul.msk.bf16.vlgmr.msra.gmra.mxu1 %vm303_vm0, %v271_v36 }
 0x106   : > { %v272_v37 = vpop.trf.xlu0 }
 0x107   : > { %886 = vmatmul.msk.bf16.vlgmr.msra.gmra.mxu3 %vm303_vm0, %v272_v37 }
 0x10e   : > { %v273_v38 = vpop.trf.xlu0 }
 0x10f   : > { %879 = vmatmul.msk.bf16.gmra.mxu1 %vm303_vm0, %v273_v38 }
 0x116   : > { %v274_v39 = vpop.trf.xlu0 }
 0x117   : > { %887 = vmatmul.msk.bf16.gmra.mxu3 %vm303_vm0, %v274_v39 }
 0x11e   : > { %v275_v40 = vpop.trf.xlu0 }
 0x11f   : > { %880 = vmatmul.msk.bf16.gmra.mxu1 %vm303_vm0, %v275_v40 }
 0x126   : > { %v276_v41 = vpop.trf.xlu0 }
 0x127   : > { %888 = vmatmul.msk.bf16.gmra.mxu3 %vm303_vm0, %v276_v41 }
 0x12e   : > { %v277_v42 = vpop.trf.xlu0 }
 0x12f   : > { %881 = vmatmul.msk.bf16.gmra.mxu1 %vm303_vm0, %v277_v42 }
 0x136   : > { %v278_v43 = vpop.trf.xlu0 }
 0x137   : > { %889 = vmatmul.msk.bf16.gmra.mxu3 %vm303_vm0, %v278_v43 }
 0x13c   : > { %v1024_v44 = vpop.f32.mrf.mxu0 }
 0x13d   : > { %v479_v61 = vmul.f32 %v1024_v44, %v1024_v44 }
 0x144   : > { %v1026_v45 = vpop.f32.mrf.mxu0 }
 0x145   : > { %v480_v59 = vmul.f32 %v1026_v45, %v1026_v45  ;;  %v441_v62 = vadd.f32 %v1026_v45, %v1024_v44 }
 0x147   : > { %v511_v1 = vadd.f32 %v480_v59, %v479_v61 }
 0x14a   : > { %v1032_v48 = vpop.f32.mrf.mxu2 }
 0x14c   : > { %v1028_v46 = vpop.f32.mrf.mxu0 }
 0x14d   : > { %v481_v63 = vmul.f32 %v1028_v46, %v1028_v46  ;;  %v442_v2 = vadd.f32 %v441_v62, %v1028_v46 }
 0x14f   : > { %v512_v5 = vadd.f32 %v511_v1, %v481_v63 }
 0x152   : > { %v1040_v52 = vpop.f32.mrf.mxu2 }
 0x154   : > { %v1030_v47 = vpop.f32.mrf.mxu0 }
 0x155   : > { %v482_v3 = vmul.f32 %v1030_v47, %v1030_v47  ;;  %v443_v6 = vadd.f32 %v442_v2, %v1030_v47 }
 0x157   : > { %v513_v8 = vadd.f32 %v512_v5, %v482_v3 }
 0x15a   : > { %v1048_v56 = vpop.f32.mrf.mxu2 }
 0x15c   : > { %v1036_v50 = vpop.f32.mrf.mxu0 }
 0x15d   : > { %v483_v7 = vmul.f32 %v1036_v50, %v1036_v50  ;;  %v444_v9 = vadd.f32 %v443_v6, %v1036_v50  ;;  %v495_v6 = vmul.f32 %v1032_v48, %v1032_v48 }
 0x15f   : > { %v514_v12 = vadd.f32 %v513_v8, %v483_v7 }
 0x162   : > { %v1064_v0 = vpop.f32.mrf.mxu2 }
 0x164   : > { %v1042_v53 = vpop.f32.mrf.mxu0 }
 0x165   : > { %v484_v10 = vmul.f32 %v1042_v53, %v1042_v53  ;;  %v445_v13 = vadd.f32 %v444_v9, %v1042_v53 }
 0x167   : > { %v515_v16 = vadd.f32 %v514_v12, %v484_v10  ;;  %v496_v10 = vmul.f32 %v1040_v52, %v1040_v52 }
 0x16a   : > { %v1087_v19 = vpop.f32.mrf.mxu2 }
 0x16c   : > { %v1052_v58 = vpop.f32.mrf.mxu0 }
 0x16d   : > { %v485_v14 = vmul.f32 %v1052_v58, %v1052_v58  ;;  %v446_v17 = vadd.f32 %v445_v13, %v1052_v58 }
 0x16f   : > { %v516_v21 = vadd.f32 %v515_v16, %v485_v14  ;;  %v497_v14 = vmul.f32 %v1048_v56, %v1048_v56 }
 0x172   : > { %v1110_v38 = vpop.f32.mrf.mxu2 }
 0x174   : > { %v1077_v11 = vpop.f32.mrf.mxu0 }
 0x175   : > { %v486_v18 = vmul.f32 %v1077_v11, %v1077_v11  ;;  %v447_v22 = vadd.f32 %v446_v17, %v1077_v11 }
 0x177   : > { %v517_v24 = vadd.f32 %v516_v21, %v486_v18  ;;  %v498_v18 = vmul.f32 %v1064_v0, %v1064_v0 }
 0x17a   : > { %v1129_v9 = vpop.f32.mrf.mxu2 }
 0x17c   : > { %v1034_v49 = vpop.f32.mrf.mxu1 }
 0x17d   : > { %v487_v23 = vmul.f32 %v1034_v49, %v1034_v49  ;;  %v448_v25 = vadd.f32 %v447_v22, %v1034_v49 }
 0x17f   : > { %v518_v27 = vadd.f32 %v517_v24, %v487_v23  ;;  %v499_v23 = vmul.f32 %v1087_v19, %v1087_v19 }
 0x184   : > { %v1038_v51 = vpop.f32.mrf.mxu1 }
 0x185   : > { %v488_v26 = vmul.f32 %v1038_v51, %v1038_v51  ;;  %v449_v28 = vadd.f32 %v448_v25, %v1038_v51 }
 0x187   : > { %v519_v30 = vadd.f32 %v518_v27, %v488_v26  ;;  %v500_v27 = vmul.f32 %v1110_v38, %v1110_v38 }
 0x18a   : > { %v1046_v55 = vpop.f32.mrf.mxu3 }
 0x18c   : > { %v1044_v54 = vpop.f32.mrf.mxu1 }
 0x18d   : > { %v489_v29 = vmul.f32 %v1044_v54, %v1044_v54  ;;  %v450_v31 = vadd.f32 %v449_v28, %v1044_v54 }
 0x18f   : > { %v520_v35 = vadd.f32 %v519_v30, %v489_v29  ;;  %v1148_v30 = vpop.f32.mrf.mxu2 }
 0x192   : > { %v1056_v60 = vpop.f32.mrf.mxu3 }
 0x194   : > { %v1050_v57 = vpop.f32.mrf.mxu1 }
 0x195   : > { %v490_v32 = vmul.f32 %v1050_v57, %v1050_v57  ;;  %v451_v36 = vadd.f32 %v450_v31, %v1050_v57  ;;  %v501_v31 = vmul.f32 %v1129_v9, %v1129_v9 }
 0x197   : > { %v521_v39 = vadd.f32 %v520_v35, %v490_v32 }
 0x19a   : > { %v1082_v15 = vpop.f32.mrf.mxu3 }
 0x19c   : > { %v1069_v4 = vpop.f32.mrf.mxu1 }
 0x19d   : > { %v491_v37 = vmul.f32 %v1069_v4, %v1069_v4  ;;  %v452_v40 = vadd.f32 %v451_v36, %v1069_v4  ;;  %v502_v36 = vmul.f32 %v1148_v30, %v1148_v30 }
 0x19f   : > { %v522_v42 = vadd.f32 %v521_v39, %v491_v37 }
 0x1a2   : > { %v1103_v33 = vpop.f32.mrf.mxu3 }
 0x1a4   : > { %v1089_v20 = vpop.f32.mrf.mxu1 }
 0x1a5   : > { %v492_v41 = vmul.f32 %v1089_v20, %v1089_v20  ;;  %v453_v43 = vadd.f32 %v452_v40, %v1089_v20  ;;  %v503_v40 = vmul.f32 %v1046_v55, %v1046_v55 }
 0x1a7   : > { %v523_v61 = vadd.f32 %v522_v42, %v492_v41 }
 0x1aa   : > { %v1124_v5 = vpop.f32.mrf.mxu3 }
 0x1ac   : > { %v1105_v34 = vpop.f32.mrf.mxu1 }
 0x1ad   : > { %v493_v59 = vmul.f32 %v1105_v34, %v1105_v34  ;;  %v454_v62 = vadd.f32 %v453_v43, %v1105_v34 }
 0x1af   : > { %v524_v1 = vadd.f32 %v523_v61, %v493_v59  ;;  %v504_v59 = vmul.f32 %v1056_v60, %v1056_v60 }
 0x1b2   : > { %v1143_v26 = vpop.f32.mrf.mxu3 }
 0x1b4   : > { %v1119_v63 = vpop.f32.mrf.mxu1 }
 0x1b5   : > { %v455_v2 = vadd.f32 %v454_v62, %v1119_v63  ;;  %v494_v3 = vmul.f32 %v1119_v63, %v1119_v63 }
 0x1b7   : > { %v456_v7 = vadd.f32 %v455_v2, %v1032_v48  ;;  %v525_v8 = vadd.f32 %v524_v1, %v494_v3  ;;  %v505_v1 = vmul.f32 %v1082_v15, %v1082_v15 }
 0x1b9   : > { %v457_v12 = vadd.f32 %v456_v7, %v1040_v52  ;;  %v526_v13 = vadd.f32 %v525_v8, %v495_v6  ;;  %v506_v6 = vmul.f32 %v1103_v33, %v1103_v33 }
 0x1ba   : > { %v1159_v43 = vpop.f32.mrf.mxu3 }
 0x1bb   : > { %v458_v16 = vadd.f32 %v457_v12, %v1048_v56  ;;  %v527_v17 = vadd.f32 %v526_v13, %v496_v10  ;;  %v507_v10 = vmul.f32 %v1124_v5, %v1124_v5 }
 0x1bd   : > { %v459_v21 = vadd.f32 %v458_v16, %v1064_v0  ;;  %v528_v22 = vadd.f32 %v527_v17, %v497_v14  ;;  %v508_v14 = vmul.f32 %v1143_v26, %v1143_v26 }
 0x1bf   : > { %v460_v24 = vadd.f32 %v459_v21, %v1087_v19  ;;  %v529_v25 = vadd.f32 %v528_v22, %v498_v18  ;;  %v509_v22 = vmul.f32 %v1159_v43, %v1159_v43 }
 0x1c1   : > { %v461_v28 = vadd.f32 %v460_v24, %v1110_v38  ;;  %v530_v29 = vadd.f32 %v529_v25, %v499_v23 }
 0x1c2   : > { %v1176_v18 = vpop.f32.mrf.mxu3 }
 0x1c3   : > { %v462_v32 = vadd.f32 %v461_v28, %v1129_v9  ;;  %v531_v35 = vadd.f32 %v530_v29, %v500_v27  ;;  %v510_v27 = vmul.f32 %v1176_v18, %v1176_v18 }
 0x1c5   : > { %v532_v37 = vadd.f32 %v531_v35, %v501_v31  ;;  %v463_v39 = vadd.f32 %v462_v32, %v1148_v30 }
 0x1c7   : > { %v464_v41 = vadd.f32 %v463_v39, %v1046_v55  ;;  %v533_v42 = vadd.f32 %v532_v37, %v502_v36 }
 0x1c9   : > { %v465_v61 = vadd.f32 %v464_v41, %v1056_v60  ;;  %v534_v62 = vadd.f32 %v533_v42, %v503_v40 }
 0x1cb   : > { %v466_v2 = vadd.f32 %v465_v61, %v1082_v15  ;;  %v535_v3 = vadd.f32 %v534_v62, %v504_v59 }
 0x1cd   : > { %v467_v7 = vadd.f32 %v466_v2, %v1103_v33  ;;  %v536_v8 = vadd.f32 %v535_v3, %v505_v1 }
 0x1cf   : > { %v468_v12 = vadd.f32 %v467_v7, %v1124_v5  ;;  %v537_v13 = vadd.f32 %v536_v8, %v506_v6 }
 0x1d1   : > { %v469_v16 = vadd.f32 %v468_v12, %v1143_v26  ;;  %v538_v17 = vadd.f32 %v537_v13, %v507_v10 }
 0x1d3   : > { %v470_v21 = vadd.f32 %v469_v16, %v1159_v43  ;;  %v539_v23 = vadd.f32 %v538_v17, %v508_v14 }
 0x1d5   : > { %v540_v24 = vadd.f32 %v539_v23, %v509_v22  ;;  %v471_v25 = vadd.f32 %v470_v21, %v1176_v18 }
 0x1d7   : > { %v472_v28 = vrot.slane %v471_v25, 4  ;;  %v541_v29 = vadd.f32 %v540_v24, %v510_v27 }
 0x1d9   : > { %v473_v31 = vadd.f32 %v472_v28, %v471_v25  ;;  %v542_v32 = vrot.slane %v541_v29, 4 }
 0x1db   : > { %v474_v35 = vrot.slane %v473_v31, 2  ;;  %v543_v36 = vadd.f32 %v542_v32, %v541_v29 }
 0x1dd   : > { %v475_v37 = vadd.f32 %v474_v35, %v473_v31  ;;  %v544_v39 = vrot.slane %v543_v36, 2 }
 0x1df   : > { %v476_v40 = vrot.slane %v475_v37, 1  ;;  %v545_v41 = vadd.f32 %v544_v39, %v543_v36 }
 0x1e1   : > { %v477_v42 = vadd.f32 %v476_v40, %v475_v37  ;;  %v546_v59 = vrot.slane %v545_v41, 1 }
 0x1e3   : > { %v1184_v61 = vmul.f32 0.00390625, %v477_v42  ;;  %v547_v62 = vadd.f32 %v546_v59, %v545_v41 }
 0x1e5   : > { %v548_v1 = vmul.f32 0.00390625, %v547_v62  ;;  %v549_v2 = vmul.f32 %v1184_v61, %v1184_v61  ;;  %v551_v16 = vsub.f32 %v1024_v44, %v1184_v61  ;;  %v552_v17 = vsub.f32 %v1026_v45, %v1184_v61  ;;  %v1260_v62 = vld [vmem:[%s1446_s3] ss:$0 sm:$0xff] }
 0x1e6   : > { %v553_v21 = vsub.f32 %v1028_v46, %v1184_v61  ;;  %v554_v22 = vsub.f32 %v1030_v47, %v1184_v61  ;;  %v555_v23 = vsub.f32 %v1036_v50, %v1184_v61  ;;  %v556_v24 = vsub.f32 %v1042_v53, %v1184_v61 }
 0x1e7   : > { %v550_v3 = vsub.f32 %v548_v1, %v549_v2  ;;  %v557_v44 = vsub.f32 %v1052_v58, %v1184_v61  ;;  %v558_v25 = vsub.f32 %v1077_v11, %v1184_v61  ;;  %v559_v46 = vsub.f32 %v1034_v49, %v1184_v61 }
 0x1e8   : > { %v560_v47 = vsub.f32 %v1038_v51, %v1184_v61  ;;  %v561_v50 = vsub.f32 %v1044_v54, %v1184_v61  ;;  %v562_v53 = vsub.f32 %v1050_v57, %v1184_v61  ;;  %v563_v58 = vsub.f32 %v1069_v4, %v1184_v61  ;;  %v1230_v4 = vld [vmem:[%s1445_s2] ss:$0 sm:$0xff] }
 0x1e9   : > { %v583_v6 = vadd.f32 1e-05, %v550_v3  ;;  %v564_v11 = vsub.f32 %v1089_v20, %v1184_v61  ;;  %v565_v27 = vsub.f32 %v1105_v34, %v1184_v61  ;;  %v566_v49 = vsub.f32 %v1119_v63, %v1184_v61 }
 0x1ea   : > { %v567_v51 = vsub.f32 %v1032_v48, %v1184_v61  ;;  %v568_v20 = vsub.f32 %v1040_v52, %v1184_v61  ;;  %v569_v34 = vsub.f32 %v1048_v56, %v1184_v61  ;;  %v570_v48 = vsub.f32 %v1064_v0, %v1184_v61 }
 0x1eb   : > { %929 = vrsqrt.f32 %v583_v6  ;;  %vm590_vm2 = vweird.f32 %v583_v6  ;;  %v571_v29 = vsub.f32 %v1087_v19, %v1184_v61  ;;  %v572_v31 = vsub.f32 %v1110_v38, %v1184_v61 }
 0x1ec   : > { %v573_v32 = vsub.f32 %v1129_v9, %v1184_v61  ;;  %v574_v52 = vsub.f32 %v1148_v30, %v1184_v61  ;;  %v575_v36 = vsub.f32 %v1046_v55, %v1184_v61  ;;  %v576_v37 = vsub.f32 %v1056_v60, %v1184_v61 }
 0x1ed   : > { %v577_v1 = vsub.f32 %v1082_v15, %v1184_v61  ;;  %v578_v2 = vsub.f32 %v1103_v33, %v1184_v61 }
 0x1f1   : > { %v930_v7 = vpop.eup %929 }
 0x1f2   : > { %v585_v8 = vmul.f32 %v930_v7, %v583_v6  ;;  %vm591_vm1 = vweird.f32 %v930_v7 }
 0x1f3   : > { %vm592_vm3 = vmor %vm590_vm2, %vm591_vm1 }
 0x1f4   : > { %v586_v10 = vmul.f32 %v930_v7, %v585_v8  ;;  %v580_v8 = vsub.f32 %v1143_v26, %v1184_v61 }
 0x1f6   : > { %v587_v12 = vmul.f32 0.5, %v586_v10 }
 0x1f8   : > { %v588_v13 = vsub.f32 1.5, %v587_v12 }
 0x1fa   : > { %v589_v14 = vmul.f32 %v930_v7, %v588_v13  ;;  %v581_v13 = vsub.f32 %v1159_v43, %v1184_v61 }
 0x1fc   : > { %v1204_v45 = vsel %vm592_vm3, %v930_v7, %v589_v14  ;;  %v579_v7 = vsub.f32 %v1124_v5, %v1184_v61 }
 0x1fd   : > { %v594_v54 = vmul.f32 %v1204_v45, %v551_v16  ;;  %v595_v28 = vmul.f32 %v1204_v45, %v552_v17  ;;  %v596_v57 = vmul.f32 %v1204_v45, %v553_v21  ;;  %v597_v63 = vmul.f32 %v1204_v45, %v554_v22 }
 0x1fe   : > { %v598_v35 = vmul.f32 %v1204_v45, %v555_v23  ;;  %v599_v39 = vmul.f32 %v1204_v45, %v556_v24  ;;  %v600_v40 = vmul.f32 %v1204_v45, %v557_v44  ;;  %v601_v3 = vmul.f32 %v1204_v45, %v558_v25 }
 0x1ff   : > { %v630_v41 = vmul.f32 %v1230_v4, %v594_v54  ;;  %v631_v42 = vmul.f32 %v1230_v4, %v595_v28  ;;  %v632_v59 = vmul.f32 %v1230_v4, %v596_v57  ;;  %v633_v6 = vmul.f32 %v1230_v4, %v597_v63 }
 0x200   : > { %v602_v10 = vmul.f32 %v1204_v45, %v559_v46  ;;  %v634_v12 = vmul.f32 %v1230_v4, %v598_v35  ;;  %v603_v14 = vmul.f32 %v1204_v45, %v560_v47  ;;  %v604_v16 = vmul.f32 %v1204_v45, %v561_v50 }
 0x201   : > { %v635_v17 = vmul.f32 %v1230_v4, %v599_v39  ;;  %v636_v21 = vmul.f32 %v1230_v4, %v600_v40  ;;  %v666_v22 = vadd.f32 %v1260_v62, %v630_v41  ;;  %v667_v23 = vadd.f32 %v1260_v62, %v631_v42 }
 0x202   : > { %v668_v24 = vadd.f32 %v1260_v62, %v632_v59  ;;  %v582_v44 = vsub.f32 %v1176_v18, %v1184_v61  ;;  %v605_v25 = vmul.f32 %v1204_v45, %v562_v53  ;;  %v637_v46 = vmul.f32 %v1230_v4, %v601_v3 }
 0x203   : > { %v669_v47 = vadd.f32 %v1260_v62, %v633_v6  ;;  %v606_v50 = vmul.f32 %v1204_v45, %v563_v58  ;;  %v607_v54 = vmul.f32 %v1204_v45, %v564_v11  ;;  %v638_v28 = vmul.f32 %v1230_v4, %v602_v10 }
 0x204   : > { %v670_v57 = vadd.f32 %v1260_v62, %v634_v12  ;;  %v608_v63 = vmul.f32 %v1204_v45, %v565_v27  ;;  %v639_v53 = vmul.f32 %v1230_v4, %v603_v14  ;;  %v640_v35 = vmul.f32 %v1230_v4, %v604_v16 }
 0x205   : > { %v671_v58 = vadd.f32 %v1260_v62, %v635_v17  ;;  %v672_v11 = vadd.f32 %v1260_v62, %v636_v21  ;;  %v698_v39 = vmax.f32 %v666_v22, 0.0  ;;  %v699_v40 = vmax.f32 %v667_v23, 0.0 }
 0x206   : > { %v700_v41 = vmax.f32 %v668_v24, 0.0  ;;  %v609_v42 = vmul.f32 %v1204_v45, %v566_v49  ;;  %v641_v59 = vmul.f32 %v1230_v4, %v605_v25  ;;  %v673_v3 = vadd.f32 %v1260_v62, %v637_v46 }
 0x207   : > { %v701_v27 = vmax.f32 %v669_v47, 0.0  ;;  %v610_v6 = vmul.f32 %v1204_v45, %v567_v51  ;;  %v642_v10 = vmul.f32 %v1230_v4, %v606_v50  ;;  %v674_v12 = vadd.f32 %v1260_v62, %v638_v28  ;;  %730 = vst [vmem:[%s1296_s10] sm:$0xff] %v698_v39 }
 0x208   : > { %v702_v14 = vmax.f32 %v670_v57, 0.0  ;;  %v611_v16 = vmul.f32 %v1204_v45, %v568_v20  ;;  %v643_v17 = vmul.f32 %v1230_v4, %v607_v54  ;;  %v675_v49 = vadd.f32 %v1260_v62, %v639_v53  ;;  %731 = vst [vmem:[%s1296_s10 + $0x8] sm:$0xff] %v699_v40 }
 0x209   : > { %v703_v21 = vmax.f32 %v671_v58, 0.0  ;;  %v612_v51 = vmul.f32 %v1204_v45, %v569_v34  ;;  %v644_v22 = vmul.f32 %v1230_v4, %v608_v63  ;;  %v676_v23 = vadd.f32 %v1260_v62, %v640_v35  ;;  %732 = vst [vmem:[%s1296_s10 + $0x10] sm:$0xff] %v700_v41 }
 0x20a   : > { %v704_v24 = vmax.f32 %v672_v11, 0.0  ;;  %v613_v20 = vmul.f32 %v1204_v45, %v570_v48  ;;  %v645_v25 = vmul.f32 %v1230_v4, %v609_v42  ;;  %v677_v46 = vadd.f32 %v1260_v62, %v641_v59  ;;  %733 = vst [vmem:[%s1296_s10 + $0x18] sm:$0xff] %v701_v27 }
 0x20b   : > { %v705_v47 = vmax.f32 %v673_v3, 0.0  ;;  %v614_v56 = vmul.f32 %v1204_v45, %v571_v29  ;;  %v646_v34 = vmul.f32 %v1230_v4, %v610_v6  ;;  %v678_v50 = vadd.f32 %v1260_v62, %v642_v10  ;;  %734 = vst [vmem:[%s1296_s10 + $0x20] sm:$0xff] %v702_v14 }
 0x20c   : > { %v706_v54 = vmax.f32 %v674_v12, 0.0  ;;  %v615_v0 = vmul.f32 %v1204_v45, %v572_v31  ;;  %v647_v48 = vmul.f32 %v1230_v4, %v611_v16  ;;  %v679_v28 = vadd.f32 %v1260_v62, %v643_v17  ;;  %735 = vst [vmem:[%s1296_s10 + $0x28] sm:$0xff] %v703_v21 }
 0x20d   : > { %v707_v57 = vmax.f32 %v675_v49, 0.0  ;;  %v616_v19 = vmul.f32 %v1204_v45, %v573_v32  ;;  %v648_v29 = vmul.f32 %v1230_v4, %v612_v51  ;;  %v680_v63 = vadd.f32 %v1260_v62, %v644_v22  ;;  %736 = vst [vmem:[%s1296_s10 + $0x30] sm:$0xff] %v704_v24 }
 0x20e   : > { %v708_v53 = vmax.f32 %v676_v23, 0.0  ;;  %v617_v38 = vmul.f32 %v1204_v45, %v574_v52  ;;  %v649_v31 = vmul.f32 %v1230_v4, %v613_v20  ;;  %v681_v35 = vadd.f32 %v1260_v62, %v645_v25  ;;  %737 = vst [vmem:[%s1296_s10 + $0x38] sm:$0xff] %v705_v47 }
 0x20f   : > { %v709_v58 = vmax.f32 %v677_v46, 0.0  ;;  %v618_v9 = vmul.f32 %v1204_v45, %v575_v36  ;;  %v650_v32 = vmul.f32 %v1230_v4, %v614_v56  ;;  %v682_v11 = vadd.f32 %v1260_v62, %v646_v34  ;;  %738 = vst [vmem:[%s1296_s10 + $0x40] sm:$0xff] %v706_v54 }
 0x210   : > { %v710_v39 = vmax.f32 %v678_v50, 0.0  ;;  %v619_v30 = vmul.f32 %v1204_v45, %v576_v37  ;;  %v651_v52 = vmul.f32 %v1230_v4, %v615_v0  ;;  %v683_v40 = vadd.f32 %v1260_v62, %v647_v48  ;;  %739 = vst [vmem:[%s1296_s10 + $0x48] sm:$0xff] %v707_v57 }
 0x211   : > { %v711_v41 = vmax.f32 %v679_v28, 0.0  ;;  %v620_v55 = vmul.f32 %v1204_v45, %v577_v1  ;;  %v652_v36 = vmul.f32 %v1230_v4, %v616_v19  ;;  %v684_v42 = vadd.f32 %v1260_v62, %v648_v29  ;;  %740 = vst [vmem:[%s1296_s10 + $0x50] sm:$0xff] %v708_v53 }
 0x212   : > { %v712_v59 = vmax.f32 %v680_v63, 0.0  ;;  %v621_v60 = vmul.f32 %v1204_v45, %v578_v2  ;;  %v653_v37 = vmul.f32 %v1230_v4, %v617_v38  ;;  %v685_v3 = vadd.f32 %v1260_v62, %v649_v31  ;;  %741 = vst [vmem:[%s1296_s10 + $0x58] sm:$0xff] %v709_v58 }
 0x213   : > { %v713_v27 = vmax.f32 %v681_v35, 0.0  ;;  %v622_v15 = vmul.f32 %v1204_v45, %v579_v7  ;;  %v654_v1 = vmul.f32 %v1230_v4, %v618_v9  ;;  %v686_v6 = vadd.f32 %v1260_v62, %v650_v32  ;;  %742 = vst [vmem:[%s1296_s10 + $0x60] sm:$0xff] %v710_v39 }
 0x214   : > { %v714_v10 = vmax.f32 %v682_v11, 0.0  ;;  %v623_v33 = vmul.f32 %v1204_v45, %v580_v8  ;;  %v655_v2 = vmul.f32 %v1230_v4, %v619_v30  ;;  %v687_v12 = vadd.f32 %v1260_v62, %v651_v52  ;;  %743 = vst [vmem:[%s1296_s10 + $0x68] sm:$0xff] %v711_v41 }
 0x215   : > { %v715_v5 = vmax.f32 %v683_v40, 0.0  ;;  %v624_v7 = vmul.f32 %v1204_v45, %v581_v13  ;;  %v656_v14 = vmul.f32 %v1230_v4, %v620_v55  ;;  %v688_v16 = vadd.f32 %v1260_v62, %v652_v36  ;;  %744 = vst [vmem:[%s1296_s10 + $0x70] sm:$0xff] %v712_v59 }
 0x216   : > { %v716_v26 = vmax.f32 %v684_v42, 0.0  ;;  %v625_v8 = vmul.f32 %v1204_v45, %v582_v44  ;;  %v657_v17 = vmul.f32 %v1230_v4, %v621_v60  ;;  %v689_v49 = vadd.f32 %v1260_v62, %v653_v37  ;;  %745 = vst [vmem:[%s1296_s10 + $0x78] sm:$0xff] %v713_v27 }
 0x217   : > { %v717_v43 = vmax.f32 %v685_v3, 0.0  ;;  %v658_v13 = vmul.f32 %v1230_v4, %v622_v15  ;;  %v690_v21 = vadd.f32 %v1260_v62, %v654_v1  ;;  %v718_v51 = vmax.f32 %v686_v6, 0.0  ;;  %746 = vst [vmem:[%s1296_s10 + $0x80] sm:$0xff] %v714_v10 }
 0x218   : > { %v659_v22 = vmul.f32 %v1230_v4, %v623_v33  ;;  %v691_v18 = vadd.f32 %v1260_v62, %v655_v2  ;;  %v719_v61 = vmax.f32 %v687_v12, 0.0  ;;  %747 = vst [vmem:[%s1296_s10 + $0x88] sm:$0xff] %v715_v5  ;;  %v660_v45 = vmul.f32 %v1230_v4, %v624_v7 }
 0x219   : > { %v692_v44 = vadd.f32 %v1260_v62, %v656_v14  ;;  %v720_v23 = vmax.f32 %v688_v16, 0.0  ;;  %748 = vst [vmem:[%s1296_s10 + $0x90] sm:$0xff] %v716_v26  ;;  %v661_v24 = vmul.f32 %v1230_v4, %v625_v8  ;;  %v693_v20 = vadd.f32 %v1260_v62, %v657_v17 }
 0x21a   : > { %v721_v25 = vmax.f32 %v689_v49, 0.0  ;;  %749 = vst [vmem:[%s1296_s10 + $0x98] sm:$0xff] %v717_v43  ;;  %v694_v46 = vadd.f32 %v1260_v62, %v658_v13  ;;  %v722_v47 = vmax.f32 %v690_v21, 0.0  ;;  %v695_v56 = vadd.f32 %v1260_v62, %v659_v22 }
 0x21b   : > { %750 = vst [vmem:[%s1296_s10 + $0xa0] sm:$0xff] %v718_v51  ;;  %v723_v34 = vmax.f32 %v691_v18, 0.0  ;;  %v696_v4 = vadd.f32 %v1260_v62, %v660_v45  ;;  %v724_v50 = vmax.f32 %v692_v44, 0.0  ;;  %v697_v54 = vadd.f32 %v1260_v62, %v661_v24 }
 0x21c   : > { %751 = vst [vmem:[%s1296_s10 + $0xa8] sm:$0xff] %v719_v61  ;;  %v725_v0 = vmax.f32 %v693_v20, 0.0  ;;  %v726_v48 = vmax.f32 %v694_v46, 0.0  ;;  %v727_v28 = vmax.f32 %v695_v56, 0.0 }
 0x21d   : > { %752 = vst [vmem:[%s1296_s10 + $0xb0] sm:$0xff] %v720_v23  ;;  %v728_v57 = vmax.f32 %v696_v4, 0.0  ;;  %v729_v19 = vmax.f32 %v697_v54, 0.0 }
 0x21e   : > { %753 = vst [vmem:[%s1296_s10 + $0xb8] sm:$0xff] %v721_v25 }
 0x21f   : > { %754 = vst [vmem:[%s1296_s10 + $0xc0] sm:$0xff] %v722_v47 }
 0x220   : > { %755 = vst [vmem:[%s1296_s10 + $0xc8] sm:$0xff] %v723_v34 }
 0x221   : > { %756 = vst [vmem:[%s1296_s10 + $0xd0] sm:$0xff] %v724_v50 }
 0x222   : > { %757 = vst [vmem:[%s1296_s10 + $0xd8] sm:$0xff] %v725_v0 }
 0x223   : > { %758 = vst [vmem:[%s1296_s10 + $0xe0] sm:$0xff] %v726_v48 }
 0x224   : > { %759 = vst [vmem:[%s1296_s10 + $0xe8] sm:$0xff] %v727_v28 }
 0x225   : > { %760 = vst [vmem:[%s1296_s10 + $0xf0] sm:$0xff] %v728_v57 }
 0x226   : > { %761 = vst [vmem:[%s1296_s10 + $0xf8] sm:$0xff] %v729_v19 }
 0x227 PF: > { %s14_s15 = sadd.s32 1, %s937_s15  }
 0x228   : > { %p11_p4 = scmp.ge.s32.totalorder %s14_s15, 4  }
 0x22a   :  { %13 = sbr.rel (!%p11_p4) target bundleno = 1 (0x1), region = 66 }

</bundles_post_ra>
